<compile_context>
chip_gen: v6e
topology: v6e:2x2x1
jax: 0.10.0
libtpu: 0.0.40
codegen_flags: <defaults>
</compile_context>

<pallas_src>
import jax
import jax.numpy as jnp
from jax.experimental import pallas as pl
from jax.experimental.pallas import tpu as pltpu

EPS = 1e-5
# MXU-native dtype on v5e/v6e/v7x; all accumulation / BN / residual math stays f32.
MATMUL_DTYPE = jnp.bfloat16


def _mod(v, m):
    # Power-of-two moduli (always the case for CIFAR ResNet channel counts / spatial
    # sizes) lower to a bitwise AND on the VPU.
    if (m & (m - 1)) == 0:
        return v & (m - 1)
    return v % m


def _make_block_kernel(N, H, W, Cout):
    LC = W * Cout              # lane width of every slab (128 for the demo shapes)
    M = N * H                  # rows of every slab
    inv_cnt = 1.0 / float(N * H * W)

    def channel_fold_matrix():
        # g[i, j] = 1 iff lane-column i and j map to the same channel (i % C == j % C).
        ci = _mod(jax.lax.broadcasted_iota(jnp.int32, (LC, LC), 0), Cout)
        cj = _mod(jax.lax.broadcasted_iota(jnp.int32, (LC, LC), 1), Cout)
        return (ci == cj).astype(jnp.float32)

    def bn_scale_shift(acc, g_mat, gamma, beta):
        # One-pass batch stats; s1/s2 stacked into a single (2, LC) @ (LC, LC) MXU dot
        # that folds per-(w,c) column sums into per-channel sums broadcast to lanes.
        # NOTE: E[x^2]-E[x]^2 is the one-pass biased estimator; fine for the normalized
        # activations this block sees (two-pass would cost an extra full-slab pass).
        s1 = jnp.sum(acc, axis=0, keepdims=True)
        s2 = jnp.sum(acc * acc, axis=0, keepdims=True)
        folded = jnp.dot(jnp.concatenate([s1, s2], axis=0), g_mat,
                         preferred_element_type=jnp.float32) * inv_cnt
        mean = folded[0:1, :]
        var = folded[1:2, :] - mean * mean
        scale = gamma * jax.lax.rsqrt(var + EPS)     # rsqrt -> EUP slot
        shift = beta - mean * scale
        return scale, shift

    def shifted_lhs(src, mask_top, mask_bot):
        # (M, 3*LC) bf16 LHS for one fused 3x3-conv matmul.  Row h of the ky=0 / ky=2
        # chunk holds row h-1 / h+1 of src (zero at image boundaries); the shift is a
        # sublane rotation on the XLU (pltpu.roll) -- no misaligned slices, no scratch.
        up = jnp.where(mask_top, pltpu.roll(src, 1, axis=0), 0.0)        # row h <- h-1
        down = jnp.where(mask_bot, pltpu.roll(src, M - 1, axis=0), 0.0)  # row h <- h+1
        return jnp.concatenate([up, src, down], axis=1).astype(MATMUL_DTYPE)

    def kernel(x_ref, bwa_ref, bwb_ref, ga_ref, ba_ref, gb_ref, bb_ref, out_ref):
        g_mat = channel_fold_matrix()
        h_idx = _mod(jax.lax.broadcasted_iota(jnp.int32, (M, 1), 0), H)
        mask_top = h_idx != 0          # ky=0 tap invalid on the first row of an image
        mask_bot = h_idx != (H - 1)    # ky=2 tap invalid on the last row of an image

        # Whole (small) batch resident; x doubles as the identity residual.
        x = x_ref[...]                                           # (M, LC) f32

        # conv_a (single K=3*LC bf16 MXU matmul) -> bn_a + relu (fused scale/shift)
        acc = jnp.dot(shifted_lhs(x, mask_top, mask_bot), bwa_ref[...],
                      preferred_element_type=jnp.float32)
        sa, ta = bn_scale_shift(acc, g_mat, ga_ref[...], ba_ref[...])
        y = jnp.maximum(acc * sa + ta, 0.0)

        # conv_b -> bn_b
        acc2 = jnp.dot(shifted_lhs(y, mask_top, mask_bot), bwb_ref[...],
                       preferred_element_type=jnp.float32)
        sb, tb = bn_scale_shift(acc2, g_mat, gb_ref[...], bb_ref[...])

        # identity residual + relu; lane-dense full-width store
        out_ref[...] = jnp.maximum(x + acc2 * sb + tb, 0.0).astype(out_ref.dtype)

    return kernel


def _band_weights(w_oihw, W):
    """(Cout, Cin, 3, 3) -> (3*W*Cin, W*Cout) banded weight matrix.

    kx and cin are folded into K, the three ky taps are stacked along K (matching the
    kernel's LHS chunk order [ky=0 | ky=1 | ky=2]), and the conv's W zero-padding is
    realized implicitly by the band structure:
      B[ky, wi*Cin+ci, wo*Cout+co] = w[co, ci, ky, wi-wo+1] if 0 <= wi-wo+1 <= 2 else 0.
    """
    Co, Ci, KH, KW = w_oihw.shape
    w_k = jnp.transpose(w_oihw, (2, 3, 1, 0))                   # (ky, kx, ci, co)
    wi = jnp.arange(W)[None, :, None]
    wo = jnp.arange(W)[None, None, :]
    kx = jnp.arange(KW)[:, None, None]
    mask = (wi == wo + kx - 1).astype(w_oihw.dtype)             # (KW, W, W)
    band = jnp.einsum('xab,yxio->yaibo', mask, w_k)             # (KH, W, Ci, W, Co)
    return band.reshape(KH * W * Ci, W * Co)


def resnet_basicblock(x_nchw, wa, ga, ba, wb, gb, bb):
    """Fused ResNetBasicblock forward (stride=1, identity shortcut, training-mode BN).

    x_nchw: (N, C, H, W) float32; wa/wb: (Cout, Cin, 3, 3) PyTorch layout.
    For a stacked network, keep activations in the kernel's native (N*H, W*C) rows
    format so the NCHW<->rows conversion happens once, not per block.
    """
    N, Cin, H, W = x_nchw.shape
    Cout = wa.shape[0]
    assert Cin == Cout, "identity shortcut requires inplanes == planes, stride == 1"
    LC = W * Cout
    M = N * H

    # NHWC rows flattened to a lane-dense (w, c) axis.  No padding is materialized:
    # the W halo lives inside the band weights; the H halo is handled by in-kernel
    # pltpu.roll + boundary masks.
    x_rows = jnp.transpose(x_nchw, (0, 2, 3, 1)).reshape(M, W * Cin).astype(jnp.float32)

    bwa = _band_weights(wa, W).astype(MATMUL_DTYPE)              # (3*W*Cin, W*Cout)
    bwb = _band_weights(wb, W).astype(MATMUL_DTYPE)
    gaf = jnp.tile(ga, W).reshape(1, LC).astype(jnp.float32)
    baf = jnp.tile(ba, W).reshape(1, LC).astype(jnp.float32)
    gbf = jnp.tile(gb, W).reshape(1, LC).astype(jnp.float32)
    bbf = jnp.tile(bb, W).reshape(1, LC).astype(jnp.float32)

    flops = 2 * (2 * M * (3 * LC) * LC) + 2 * (2 * 2 * LC * LC)  # conv matmuls + stat folds
    bytes_accessed = 4 * (M * LC + M * LC + 4 * LC) + 2 * (bwa.size + bwb.size)

    vm = pl.BlockSpec(memory_space=pltpu.MemorySpace.VMEM)
    out = pl.pallas_call(
        _make_block_kernel(N, H, W, Cout),
        out_shape=jax.ShapeDtypeStruct((M, LC), jnp.float32),
        in_specs=[vm] * 7,
        out_specs=vm,
        cost_estimate=pl.CostEstimate(flops=flops, transcendentals=2 * LC,
                                      bytes_accessed=bytes_accessed),
        compiler_params=pltpu.CompilerParams(vmem_limit_bytes=32 * 1024 * 1024),
    )(x_rows, bwa, bwb, gaf, baf, gbf, bbf)

    return jnp.transpose(out.reshape(N, H, W, Cout), (0, 3, 1, 2)).astype(x_nchw.dtype)


def _reference(x, wa, ga, ba, wb, gb, bb):
    # Reference rounds the conv operands to bf16 exactly like the kernel's MXU path
    # (accumulation in f32), so it tracks the fused kernel to ~1e-3.
    def conv(x, w):
        return jax.lax.conv_general_dilated(
            x.astype(MATMUL_DTYPE), w.astype(MATMUL_DTYPE),
            window_strides=(1, 1), padding=((1, 1), (1, 1)),
            dimension_numbers=("NCHW", "OIHW", "NCHW"),
            preferred_element_type=jnp.float32)

    def bn(x, g, b):
        m = jnp.mean(x, axis=(0, 2, 3), keepdims=True)
        v = jnp.mean((x - m) ** 2, axis=(0, 2, 3), keepdims=True)
        return (x - m) * jax.lax.rsqrt(v + EPS) * g.reshape(1, -1, 1, 1) \
            + b.reshape(1, -1, 1, 1)

    y = jax.nn.relu(bn(conv(x, wa), ga, ba))
    y = bn(conv(y, wb), gb, bb)
    return jax.nn.relu(x + y)


if __name__ == "__main__":
    # Small shapes: inplanes = planes = 8, stride = 1, downsample = None.
    # W * C = 128 -> every slab is exactly one 128-lane tile wide (it is a multiple of
    # 128 for every real CifarResNet stage too: 32*16 = 16*32 = 8*64 = 512).
    N, C, H, W = 2, 8, 16, 16
    key = jax.random.PRNGKey(0)
    kx, kwa, kwb, kga, kba, kgb, kbb = jax.random.split(key, 7)

    x = jax.random.normal(kx, (N, C, H, W), jnp.float32)
    wa = jax.random.normal(kwa, (C, C, 3, 3), jnp.float32) * 0.1
    wb = jax.random.normal(kwb, (C, C, 3, 3), jnp.float32) * 0.1
    ga = 1.0 + 0.1 * jax.random.normal(kga, (C,), jnp.float32)
    ba = 0.1 * jax.random.normal(kba, (C,), jnp.float32)
    gb = 1.0 + 0.1 * jax.random.normal(kgb, (C,), jnp.float32)
    bb = 0.1 * jax.random.normal(kbb, (C,), jnp.float32)

    out = jax.block_until_ready(resnet_basicblock(x, wa, ga, ba, wb, gb, bb))
    ref = jax.block_until_ready(_reference(x, wa, ga, ba, wb, gb, bb))

    assert out.shape == (N, C, H, W)
    err = float(jnp.max(jnp.abs(out - ref)))
    # bf16 conv operands in both paths (f32 accumulation) -> agreement well inside 2e-2.
    assert jnp.allclose(out, ref, atol=2e-2, rtol=2e-2), err

    print("KERNEL_OK")
</pallas_src>

<mosaic_0001>
module attributes {stable_mosaic.version = 11 : i64} {
  func.func @kernel(%arg0: memref<32x128xf32, #tpu.memory_space<vmem>>, %arg1: memref<384x128xbf16, #tpu.memory_space<vmem>>, %arg2: memref<384x128xbf16, #tpu.memory_space<vmem>>, %arg3: memref<1x128xf32, #tpu.memory_space<vmem>>, %arg4: memref<1x128xf32, #tpu.memory_space<vmem>>, %arg5: memref<1x128xf32, #tpu.memory_space<vmem>>, %arg6: memref<1x128xf32, #tpu.memory_space<vmem>>, %arg7: memref<32x128xf32, #tpu.memory_space<vmem>>) attributes {dimension_semantics = [], scalar_prefetch = 0 : i64, scratch_operands = 0 : i64, tpu.core_type = #tpu.core_type<tc>} {
    %0 = tpu.iota {dimensions = array<i32: 0>} : vector<128x128xi32>
    %c7_i32 = arith.constant 7 : i32
    %1 = vector.broadcast %c7_i32 : i32 to vector<128x128xi32>
    %2 = arith.andi %0, %1 : vector<128x128xi32>
    %3 = tpu.iota {dimensions = array<i32: 1>} : vector<128x128xi32>
    %c7_i32_0 = arith.constant 7 : i32
    %4 = vector.broadcast %c7_i32_0 : i32 to vector<128x128xi32>
    %5 = arith.andi %3, %4 : vector<128x128xi32>
    %6 = arith.cmpi eq, %2, %5 : vector<128x128xi32>
    %7 = arith.extui %6 : vector<128x128xi1> to vector<128x128xi32>
    %8 = arith.sitofp %7 : vector<128x128xi32> to vector<128x128xf32>
    %9 = tpu.iota {dimensions = array<i32: 0>} : vector<32x1xi32>
    %c15_i32 = arith.constant 15 : i32
    %10 = vector.broadcast %c15_i32 : i32 to vector<32x1xi32>
    %11 = arith.andi %9, %10 : vector<32x1xi32>
    %c0_i32 = arith.constant 0 : i32
    %12 = vector.broadcast %c0_i32 : i32 to vector<32x1xi32>
    %13 = arith.cmpi ne, %11, %12 : vector<32x1xi32>
    %c15_i32_1 = arith.constant 15 : i32
    %14 = vector.broadcast %c15_i32_1 : i32 to vector<32x1xi32>
    %15 = arith.cmpi ne, %11, %14 : vector<32x1xi32>
    %c0 = arith.constant 0 : index
    %c0_2 = arith.constant 0 : index
    %16 = vector.load %arg0[%c0, %c0_2] : memref<32x128xf32, #tpu.memory_space<vmem>>, vector<32x128xf32>
    %c1_i32 = arith.constant 1 : i32
    %17 = tpu.dynamic_rotate %16 by %c1_i32 dim 0 : vector<32x128xf32>, i32 -> vector<32x128xf32>
    %cst = arith.constant 0.000000e+00 : f32
    %18 = vector.shape_cast %13 : vector<32x1xi1> to vector<32x1xi1>
    %19 = vector.broadcast %18 : vector<32x1xi1> to vector<32x128xi1>
    %20 = vector.broadcast %cst : f32 to vector<32x128xf32>
    %21 = arith.select %19, %17, %20 : vector<32x128xi1>, vector<32x128xf32>
    %c31_i32 = arith.constant 31 : i32
    %22 = tpu.dynamic_rotate %16 by %c31_i32 dim 0 : vector<32x128xf32>, i32 -> vector<32x128xf32>
    %cst_3 = arith.constant 0.000000e+00 : f32
    %23 = vector.shape_cast %15 : vector<32x1xi1> to vector<32x1xi1>
    %24 = vector.broadcast %23 : vector<32x1xi1> to vector<32x128xi1>
    %25 = vector.broadcast %cst_3 : f32 to vector<32x128xf32>
    %26 = arith.select %24, %22, %25 : vector<32x128xi1>, vector<32x128xf32>
    %27 = tpu.concatenate %21, %16, %26 in 1 : vector<32x128xf32>, vector<32x128xf32>, vector<32x128xf32> -> vector<32x384xf32>
    %28 = arith.truncf %27 : vector<32x384xf32> to vector<32x384xbf16>
    %c0_4 = arith.constant 0 : index
    %c0_5 = arith.constant 0 : index
    %29 = vector.load %arg1[%c0_4, %c0_5] : memref<384x128xbf16, #tpu.memory_space<vmem>>, vector<384x128xbf16>
    %cst_6 = arith.constant dense<0.000000e+00> : vector<32x128xf32>
    %30 = tpu.matmul %28, %29, %cst_6 {dimension_numbers = #tpu.dot_dimension_numbers<[1], [0], [0], [1], [0, 0, 1, 1], [], []>} : vector<32x384xbf16>, vector<384x128xbf16>, vector<32x128xf32> -> vector<32x128xf32>
    %c0_7 = arith.constant 0 : index
    %c0_8 = arith.constant 0 : index
    %31 = vector.load %arg3[%c0_7, %c0_8] : memref<1x128xf32, #tpu.memory_space<vmem>>, vector<1x128xf32>
    %c0_9 = arith.constant 0 : index
    %c0_10 = arith.constant 0 : index
    %32 = vector.load %arg4[%c0_9, %c0_10] : memref<1x128xf32, #tpu.memory_space<vmem>>, vector<1x128xf32>
    %cst_11 = arith.constant dense<0.000000e+00> : vector<128xf32>
    %33 = vector.multi_reduction <add>, %30, %cst_11 [0] : vector<32x128xf32> to vector<128xf32>
    %34 = vector.shape_cast %33 : vector<128xf32> to vector<1x128xf32>
    %35 = arith.mulf %30, %30 : vector<32x128xf32>
    %cst_12 = arith.constant dense<0.000000e+00> : vector<128xf32>
    %36 = vector.multi_reduction <add>, %35, %cst_12 [0] : vector<32x128xf32> to vector<128xf32>
    %37 = vector.shape_cast %36 : vector<128xf32> to vector<1x128xf32>
    %38 = tpu.concatenate %34, %37 in 0 : vector<1x128xf32>, vector<1x128xf32> -> vector<2x128xf32>
    %cst_13 = arith.constant dense<0.000000e+00> : vector<2x128xf32>
    %39 = tpu.matmul %38, %8, %cst_13 {dimension_numbers = #tpu.dot_dimension_numbers<[1], [0], [0], [1], [0, 0, 1, 1], [], []>} : vector<2x128xf32>, vector<128x128xf32>, vector<2x128xf32> -> vector<2x128xf32>
    %cst_14 = arith.constant 0.001953125 : f32
    %40 = vector.broadcast %cst_14 : f32 to vector<2x128xf32>
    %41 = arith.mulf %39, %40 : vector<2x128xf32>
    %42 = vector.extract_strided_slice %41 {offsets = [0, 0], sizes = [1, 128], strides = [1, 1]} : vector<2x128xf32> to vector<1x128xf32>
    %43 = vector.extract_strided_slice %41 {offsets = [1, 0], sizes = [1, 128], strides = [1, 1]} : vector<2x128xf32> to vector<1x128xf32>
    %44 = arith.mulf %42, %42 : vector<1x128xf32>
    %45 = arith.subf %43, %44 : vector<1x128xf32>
    %cst_15 = arith.constant 9.99999974E-6 : f32
    %46 = vector.broadcast %cst_15 : f32 to vector<1x128xf32>
    %47 = arith.addf %45, %46 : vector<1x128xf32>
    %48 = math.rsqrt %47 : vector<1x128xf32>
    %49 = arith.mulf %31, %48 : vector<1x128xf32>
    %50 = arith.mulf %42, %49 : vector<1x128xf32>
    %51 = arith.subf %32, %50 : vector<1x128xf32>
    %52 = vector.broadcast %49 : vector<1x128xf32> to vector<32x128xf32>
    %53 = arith.mulf %30, %52 : vector<32x128xf32>
    %54 = vector.broadcast %51 : vector<1x128xf32> to vector<32x128xf32>
    %55 = arith.addf %53, %54 : vector<32x128xf32>
    %cst_16 = arith.constant 0.000000e+00 : f32
    %56 = vector.broadcast %cst_16 : f32 to vector<32x128xf32>
    %57 = arith.maximumf %55, %56 : vector<32x128xf32>
    %c1_i32_17 = arith.constant 1 : i32
    %58 = tpu.dynamic_rotate %57 by %c1_i32_17 dim 0 : vector<32x128xf32>, i32 -> vector<32x128xf32>
    %cst_18 = arith.constant 0.000000e+00 : f32
    %59 = vector.shape_cast %13 : vector<32x1xi1> to vector<32x1xi1>
    %60 = vector.broadcast %59 : vector<32x1xi1> to vector<32x128xi1>
    %61 = vector.broadcast %cst_18 : f32 to vector<32x128xf32>
    %62 = arith.select %60, %58, %61 : vector<32x128xi1>, vector<32x128xf32>
    %c31_i32_19 = arith.constant 31 : i32
    %63 = tpu.dynamic_rotate %57 by %c31_i32_19 dim 0 : vector<32x128xf32>, i32 -> vector<32x128xf32>
    %cst_20 = arith.constant 0.000000e+00 : f32
    %64 = vector.shape_cast %15 : vector<32x1xi1> to vector<32x1xi1>
    %65 = vector.broadcast %64 : vector<32x1xi1> to vector<32x128xi1>
    %66 = vector.broadcast %cst_20 : f32 to vector<32x128xf32>
    %67 = arith.select %65, %63, %66 : vector<32x128xi1>, vector<32x128xf32>
    %68 = tpu.concatenate %62, %57, %67 in 1 : vector<32x128xf32>, vector<32x128xf32>, vector<32x128xf32> -> vector<32x384xf32>
    %69 = arith.truncf %68 : vector<32x384xf32> to vector<32x384xbf16>
    %c0_21 = arith.constant 0 : index
    %c0_22 = arith.constant 0 : index
    %70 = vector.load %arg2[%c0_21, %c0_22] : memref<384x128xbf16, #tpu.memory_space<vmem>>, vector<384x128xbf16>
    %cst_23 = arith.constant dense<0.000000e+00> : vector<32x128xf32>
    %71 = tpu.matmul %69, %70, %cst_23 {dimension_numbers = #tpu.dot_dimension_numbers<[1], [0], [0], [1], [0, 0, 1, 1], [], []>} : vector<32x384xbf16>, vector<384x128xbf16>, vector<32x128xf32> -> vector<32x128xf32>
    %c0_24 = arith.constant 0 : index
    %c0_25 = arith.constant 0 : index
    %72 = vector.load %arg5[%c0_24, %c0_25] : memref<1x128xf32, #tpu.memory_space<vmem>>, vector<1x128xf32>
    %c0_26 = arith.constant 0 : index
    %c0_27 = arith.constant 0 : index
    %73 = vector.load %arg6[%c0_26, %c0_27] : memref<1x128xf32, #tpu.memory_space<vmem>>, vector<1x128xf32>
    %cst_28 = arith.constant dense<0.000000e+00> : vector<128xf32>
    %74 = vector.multi_reduction <add>, %71, %cst_28 [0] : vector<32x128xf32> to vector<128xf32>
    %75 = vector.shape_cast %74 : vector<128xf32> to vector<1x128xf32>
    %76 = arith.mulf %71, %71 : vector<32x128xf32>
    %cst_29 = arith.constant dense<0.000000e+00> : vector<128xf32>
    %77 = vector.multi_reduction <add>, %76, %cst_29 [0] : vector<32x128xf32> to vector<128xf32>
    %78 = vector.shape_cast %77 : vector<128xf32> to vector<1x128xf32>
    %79 = tpu.concatenate %75, %78 in 0 : vector<1x128xf32>, vector<1x128xf32> -> vector<2x128xf32>
    %cst_30 = arith.constant dense<0.000000e+00> : vector<2x128xf32>
    %80 = tpu.matmul %79, %8, %cst_30 {dimension_numbers = #tpu.dot_dimension_numbers<[1], [0], [0], [1], [0, 0, 1, 1], [], []>} : vector<2x128xf32>, vector<128x128xf32>, vector<2x128xf32> -> vector<2x128xf32>
    %cst_31 = arith.constant 0.001953125 : f32
    %81 = vector.broadcast %cst_31 : f32 to vector<2x128xf32>
    %82 = arith.mulf %80, %81 : vector<2x128xf32>
    %83 = vector.extract_strided_slice %82 {offsets = [0, 0], sizes = [1, 128], strides = [1, 1]} : vector<2x128xf32> to vector<1x128xf32>
    %84 = vector.extract_strided_slice %82 {offsets = [1, 0], sizes = [1, 128], strides = [1, 1]} : vector<2x128xf32> to vector<1x128xf32>
    %85 = arith.mulf %83, %83 : vector<1x128xf32>
    %86 = arith.subf %84, %85 : vector<1x128xf32>
    %cst_32 = arith.constant 9.99999974E-6 : f32
    %87 = vector.broadcast %cst_32 : f32 to vector<1x128xf32>
    %88 = arith.addf %86, %87 : vector<1x128xf32>
    %89 = math.rsqrt %88 : vector<1x128xf32>
    %90 = arith.mulf %72, %89 : vector<1x128xf32>
    %91 = arith.mulf %83, %90 : vector<1x128xf32>
    %92 = arith.subf %73, %91 : vector<1x128xf32>
    %93 = vector.broadcast %90 : vector<1x128xf32> to vector<32x128xf32>
    %94 = arith.mulf %71, %93 : vector<32x128xf32>
    %95 = arith.addf %16, %94 : vector<32x128xf32>
    %96 = vector.broadcast %92 : vector<1x128xf32> to vector<32x128xf32>
    %97 = arith.addf %95, %96 : vector<32x128xf32>
    %cst_33 = arith.constant 0.000000e+00 : f32
    %98 = vector.broadcast %cst_33 : f32 to vector<32x128xf32>
    %99 = arith.maximumf %97, %98 : vector<32x128xf32>
    %c0_34 = arith.constant 0 : index
    %c0_35 = arith.constant 0 : index
    %100 = vector.load %arg7[%c0_34, %c0_35] : memref<32x128xf32, #tpu.memory_space<vmem>>, vector<32x128xf32>
    tpu.vector_store %arg7[%c0_34, %c0_35], %99 {strides = array<i32>} : memref<32x128xf32, #tpu.memory_space<vmem>>, vector<32x128xf32>,
    return
  }
}

</mosaic_0001>

<bundles_post_ra>
// kernel: tpu_custom_call.1
= control target key start
LH: loop header
LB: loop body
LE: loop exit
PB: predicated region body
PF: predicated region fallthrough
CT: control target
= control target key end

     0   :  { %12 = vsyncpa [#allocation3], 0  ;;  %s2127_s0 = inlined_call_operand.hbm [shape: f32[32,128], index: 0, kind: input, shape index: {}]   ;;  %s2128_s1 = inlined_call_operand.hbm [shape: bf16[384,128], index: 1, kind: input, shape index: {}]   ;;  %s2129_s2 = inlined_call_operand.hbm [shape: bf16[384,128], index: 2, kind: input, shape index: {}]   ;;  %s2130_s3 = inlined_call_operand.vmem [shape: f32[1,128], index: 3, kind: input, shape index: {}]   ;;  %s2131_s4 = inlined_call_operand.vmem [shape: f32[1,128], index: 4, kind: input, shape index: {}]   ;;  %s2132_s5 = inlined_call_operand.vmem [shape: f32[1,128], index: 5, kind: input, shape index: {}]   ;;  %s2133_s6 = inlined_call_operand.vmem [shape: f32[1,128], index: 6, kind: input, shape index: {}]   ;;  %s2134_s7 = inlined_call_operand.hbm [shape: f32[32,128], index: 7, kind: output, shape index: {}]  }
   0x1   :  { %13 = vsyncpa [#allocation6], 0 }
   0x2   :  { %14 = vsyncpa [#allocation4], 0  ;;  %s1639_s24 = smov [#allocation5]  }
   0x3   :  { %s32_s25 = sshll.u32 %s1639_s24, 4  ;;  %s33_s25 = int_to_ptr.vmem [resolvable:$true] %s32_s25 }
   0x4   :  { %s1561_s26 = scalar_lea.vmem %s33_s25, 3072  ;;  %p1566_p1 = scmp.lt.s32.totalorder %s33_s25, %s33_s25 }
   0x5   :  { %p1562_p0 = scmp.ne.s32.totalorder %s33_s25, %s1561_s26  ;;  %p1567_p2 = scmp.lt.s32.totalorder %s1561_s26, %s1561_s26 }
   0x7   :  { %p1568_p3 = por %p1567_p2, %p1566_p1 }
   0x9   :  { %p1569_p4 = pnand %p1568_p3, %p1562_p0 }
   0xb   :  { %1572 = shalt.err (!%p1569_p4)
}
   0xc   :  { %s1640_s27 = smov 64   ;;  %s1641_s28 = smov 4  }
   0xd   :  { %38 = dma.hbm_to_vmem [thread:$0]  %s2128_s1, 3072, %s33_s25, [#allocation6], %s1640_s27, %s1640_s27, %s1641_s28  }
   0xe   :  { %s1642_s8 = smov [#allocation2]  }
   0xf   :  { %s20_s9 = sshll.u32 %s1642_s8, 4  ;;  %s21_s9 = int_to_ptr.vmem [resolvable:$true] %s20_s9 }
  0x10   :  { %s1581_s10 = scalar_lea.vmem %s21_s9, 512  ;;  %p1586_p6 = scmp.lt.s32.totalorder %s21_s9, %s21_s9 }
  0x11   :  { %p1582_p5 = scmp.ne.s32.totalorder %s21_s9, %s1581_s10  ;;  %p1587_p7 = scmp.lt.s32.totalorder %s1581_s10, %s1581_s10 }
  0x13   :  { %p1588_p8 = por %p1587_p7, %p1586_p6 }
  0x15   :  { %p1589_p9 = pnand %p1588_p8, %p1582_p5 }
  0x17   :  { %1592 = shalt.err (!%p1589_p9)
}
  0x18   :  { %s1643_s11 = smov 128   ;;  %s1644_s12 = smov 8  }
  0x19   :  { %26 = dma.hbm_to_vmem [thread:$0]  %s2127_s0, 512, %s21_s9, [#allocation3], %s1643_s11, %s1643_s11, %s1644_s12  }
  0x1a   :  { %s1645_s1 = smov [#allocation7]  }
  0x1b   :  { %s44_s15 = sshll.u32 %s1645_s1, 4  ;;  %s45_s15 = int_to_ptr.vmem [resolvable:$true] %s44_s15 }
  0x1c   :  { %s1601_s16 = scalar_lea.vmem %s45_s15, 3072  ;;  %p1606_p11 = scmp.lt.s32.totalorder %s45_s15, %s45_s15 }
  0x1d   :  { %p1602_p10 = scmp.ne.s32.totalorder %s45_s15, %s1601_s16  ;;  %p1607_p12 = scmp.lt.s32.totalorder %s1601_s16, %s1601_s16 }
  0x1f   :  { %p1608_p13 = por %p1607_p12, %p1606_p11 }
  0x21   :  { %p1609_p0 = pnand %p1608_p13, %p1602_p10 }
  0x23   :  { %1612 = shalt.err (!%p1609_p0)
}
  0x24   :  { %50 = dma.hbm_to_vmem [thread:$0]  %s2129_s2, 3072, %s45_s15, [#allocation6], %s1640_s27, %s1640_s27, %s1641_s28  }
  0x25   :  { %1633 = dma.done.wait [#allocation3], 512  }
  0x26   :  { %1634 = vsyncadd [#allocation3], 4294966784 }
  0x27   :  { %1635 = dma.done.wait [#allocation6], 6144  }
  0x28   :  { %1636 = vsyncadd [#allocation6], 4294961152  ;;  %v1501_v0 = vld [vmem:[#allocation5 + $0x78] sm:$0xff]   ;;  %v1504_v3 = vld [vmem:[#allocation5 + $0x70] sm:$0xff]   ;;  %v69_v7 = vlaneseq  ;;  %vm1646_vm5 = vmmov 1  }
  0x29   :  { %v1502_v1 = vld [vmem:[#allocation5 + $0xb8] sm:$0xff]   ;;  %1268 = vmatprep.subr.bf16.mxu0 %v1501_v0  ;;  %v1505_v4 = vld [vmem:[#allocation5 + $0xb0] sm:$0xff]   ;;  %v1507_v6 = vld [vmem:[#allocation5 + $0x68] sm:$0xff]  }
  0x2a   :  { %v1503_v2 = vld [vmem:[#allocation5 + $0x38] sm:$0xff]   ;;  %1378 = vmatprep.subr.bf16.mxu1 %v1502_v1  ;;  %v1506_v5 = vld [vmem:[#allocation5 + $0x30] sm:$0xff]   ;;  %v1508_v8 = vld [vmem:[#allocation5 + $0xa8] sm:$0xff]   ;;  %v1705_v12 = vshrl.u32 %v69_v7, 7 }
  0x2b   :  { %1269 = vmatpush3.bf16.msra.mxu0 %v1503_v2  ;;  %1379 = vmatpush3.bf16.msra.mxu1 %v1502_v1  ;;  %v1509_v9 = vld [vmem:[#allocation5 + $0x28] sm:$0xff]   ;;  %v1510_v10 = vld [vmem:[#allocation5 + $0x60] sm:$0xff]   ;;  %v1513_v14 = vld [vmem:[#allocation5 + $0x58] sm:$0xff]  }
  0x2c   :  { %1270 = vmatprep.subr.bf16.mxu0 %v1504_v3  ;;  %1380 = vmatprep.subr.bf16.mxu1 %v1505_v4  ;;  %v1511_v11 = vld [vmem:[#allocation5 + $0xa0] sm:$0xff]   ;;  %v1514_v15 = vld [vmem:[#allocation5 + $0x98] sm:$0xff]   ;;  %v1708_v16 = vadd.s32 8, %v1705_v12  ;;  %v1516_v18 = vld [vmem:[#allocation5 + $0x50] sm:$0xff]   ;;  %v1711_v19 = vadd.s32 24, %v1705_v12  ;;  %v153_v22 = vand.u32 15, %v1705_v12 }
  0x2d   :  { %v1512_v13 = vld [vmem:[#allocation5 + $0x20] sm:$0xff]   ;;  %v1515_v17 = vld [vmem:[#allocation5 + $0x18] sm:$0xff]   ;;  %v1517_v20 = vld [vmem:[#allocation5 + $0x90] sm:$0xff]   ;;  %v1716_v24 = vadd.s32 16, %v1705_v12  ;;  %vm2135_vm0 = vcmp.lt.s32.totalorder %v1705_v12, 7  ;;  %vm2136_vm3 = vcmp.lt.s32.totalorder %v1705_v12, 1 }
  0x2e   :  { %v154_v21 = vand.u32 15, %v1708_v16  ;;  %v1518_v23 = vld [vmem:[#allocation5 + $0x10] sm:$0xff]   ;;  %v1519_v25 = vld [vmem:[#allocation5 + $0x48] sm:$0xff]   ;;  %v156_v26 = vand.u32 15, %v1711_v19  ;;  %v1522_v30 = vld [vmem:[#allocation5 + $0x40] sm:$0xff]   ;;  %vm1731_vm2 = vcmp.ne.s32.totalorder %v153_v22, 0 }
  0x2f   :  { %1271 = vmatpush3.bf16.msra.mxu0 %v1506_v5  ;;  %1381 = vmatpush3.bf16.msra.mxu1 %v1505_v4  ;;  %v1520_v27 = vld [vmem:[#allocation5 + $0x88] sm:$0xff]   ;;  %v1523_v31 = vld [vmem:[#allocation5 + $0x80] sm:$0xff]   ;;  %v155_v32 = vand.u32 15, %v1716_v24  ;;  %v1729_v35 = vld [vmem:[#allocation2 + $0x10] sm:$0xff]  ;;  %v85_v3 = vadd.s32 120, %v1705_v12  ;;  %v103_v4 = vand.u32 127, %v69_v7 }
  0x30   :  { %1272 = vmatprep.subr.bf16.mxu0 %v1507_v6  ;;  %1382 = vmatprep.subr.bf16.mxu1 %v1508_v8  ;;  %v1521_v28 = vld [vmem:[#allocation5 + $0x8] sm:$0xff]   ;;  %vm1720_vm1 = vcmp.ne.s32.totalorder %v154_v21, 15  ;;  %v1725_v33 = vld [vmem:[#allocation2] sm:$0xff]  ;;  %vm1736_vm4 = vcmp.ne.s32.totalorder %v156_v26, 15  ;;  %v1745_v42 = vld [vmem:[#allocation2 + $0x18] sm:$0xff]  ;;  %v192_v45 = vrot.slane %v1729_v35, 1 }
  0x31   :  { %v1727_v34 = vld [vmem:[#allocation2 + $0x8] sm:$0xff]  ;;  %v169_v38 = vrot.slane %v1725_v33, 7  ;;  %v190_v41 = vrot.slane %v1725_v33, 1  ;;  %v1524_v43 = vld [vmem:[#allocation5] sm:$0xff]   ;;  %vm1752_vm6 = vmpackc.low %vm1720_vm1, %vm1646_vm5  ;;  %v172_v47 = vrot.slane %v1745_v42, 7  ;;  %v193_v48 = vrot.slane %v1745_v42, 1 }
  0x32   :  { %v170_v39 = vrot.slane %v1727_v34, 7  ;;  %v212_v40 = vpack.c.bf16 %v1727_v34, %v1725_v33  ;;  %v191_v44 = vrot.slane %v1727_v34, 1  ;;  %vm1763_vm7 = vmpackc.low %vm1646_vm5, %vm1731_vm2  ;;  %vm1767_vm8 = vcmp.ne.s32.totalorder %v155_v32, 0 }
  0x33   :  { %1273 = vmatpush3.bf16.msra.mxu0 %v1509_v9  ;;  %1383 = vmatpush3.bf16.msra.mxu1 %v1508_v8  ;;  %v177_v54 = vsel %vm2136_vm3, %v172_v47, %v169_v38  ;;  %vm1780_vm9 = vmpackc.low %vm1736_vm4, %vm1646_vm5  ;;  %v171_v56 = vrot.slane %v1729_v35, 7  ;;  %v195_v58 = vsel %vm2135_vm0, %v192_v45, %v193_v48  ;;  %v198_v59 = vsel %vm2135_vm0, %v193_v48, %v190_v41 }
  0x34   :  { %1274 = vmatprep.subr.bf16.mxu0 %v1510_v10  ;;  %1384 = vmatprep.subr.bf16.mxu1 %v1511_v11  ;;  %v176_v49 = vsel %vm2136_vm3, %v169_v38, %v170_v39  ;;  %v196_v52 = vsel %vm2135_vm0, %v191_v44, %v192_v45  ;;  %v197_v53 = vsel %vm2135_vm0, %v190_v41, %v191_v44  ;;  %vm1796_vm10 = vmpackc.low %vm1646_vm5, %vm1767_vm8  ;;  %v101_v5 = vand.u32 7, %v85_v3 }
  0x35   :  { %441 = vmatprep.mubr.bf16.mxu0 %v212_v40  ;;  %v1195_v57 = vpack.c.bf16 %v196_v52, %v197_v53  ;;  %v1189_v60 = vpack.c.bf16 %v176_v49, %v177_v54  ;;  %v1198_v61 = vpack.c.bf16 %v198_v59, %v195_v58  ;;  %v215_v62 = vpack.c.bf16 %v1745_v42, %v1729_v35 }
  0x36   :  { %v174_v0 = vsel %vm2136_vm3, %v171_v56, %v172_v47  ;;  %v175_v1 = vsel %vm2136_vm3, %v170_v39, %v171_v56  ;;  %v1812_v6 = vand.u32 7, %v103_v4  ;;  %v84_v8 = vadd.s32 112, %v1705_v12 }
  0x37   :  { %1275 = vmatpush3.bf16.msra.mxu0 %v1512_v13  ;;  %1385 = vmatpush3.bf16.msra.mxu1 %v1511_v11  ;;  %v1192_v2 = vpack.c.bf16 %v174_v0, %v175_v1  ;;  %v1647_v9 = vmov 0.0   ;;  %v83_v13 = vadd.s32 104, %v1705_v12  ;;  %v81_v21 = vadd.s32 88, %v1705_v12 }
  0x38   :  { %1276 = vmatprep.subr.bf16.mxu0 %v1513_v14  ;;  %1386 = vmatprep.subr.bf16.mxu1 %v1514_v15  ;;  %vm1817_vm11 = vcmp.eq.s32.totalorder %v101_v5, %v1812_v6  ;;  %v100_v11 = vand.u32 7, %v84_v8  ;;  %v1648_v14 = vmov 1.0   ;;  %v2177_v32 = vmov 0 }
  0x39   :  { %1394 = vmatprep.mubr.msk.bf16.mxu1 %vm1752_vm6, %v1195_v57  ;;  %v77_v37 = vadd.s32 56, %v1705_v12  ;;  %v2179_v38 = vmov 0  ;;  %v76_v40 = vadd.s32 48, %v1705_v12  ;;  %v2181_v41 = vmov 0 }
  0x3a   :  { %vm1827_vm12 = vcmp.eq.s32.totalorder %v100_v11, %v1812_v6  ;;  %v75_v44 = vadd.s32 40, %v1705_v12  ;;  %v2183_v45 = vmov 0  ;;  %v74_v48 = vadd.s32 32, %v1705_v12 }
  0x3b   :  { %1277 = vmatpush3.bf16.msra.mxu0 %v1515_v17  ;;  %1387 = vmatpush3.bf16.msra.mxu1 %v1514_v15  ;;  %v99_v15 = vand.u32 7, %v83_v13  ;;  %v82_v17 = vadd.s32 96, %v1705_v12  ;;  %v93_v39 = vand.u32 7, %v77_v37  ;;  %v2185_v49 = vmov 0 }
  0x3c   :  { %1278 = vmatprep.subr.bf16.mxu0 %v1516_v18  ;;  %1388 = vmatprep.subr.bf16.mxu1 %v1517_v20  ;;  %v91_v47 = vand.u32 7, %v75_v44  ;;  %v90_v51 = vand.u32 7, %v74_v48  ;;  %v87_v52 = vand.u32 7, %v1708_v16  ;;  %v2187_v53 = vmov 0 }
  0x3d   :  { %vm1837_vm13 = vcmp.eq.s32.totalorder %v99_v15, %v1812_v6  ;;  %vm1897_vm5 = vcmp.eq.s32.totalorder %v93_v39, %v1812_v6  ;;  %v89_v54 = vand.u32 7, %v1711_v19  ;;  %v88_v56 = vand.u32 7, %v1716_v24 }
  0x3e   :  { %v2182_v41 = vsel %vm1897_vm5, 4294967295, %v2181_v41  ;;  %vm1917_vm0 = vcmp.eq.s32.totalorder %v91_v47, %v1812_v6  ;;  %vm1927_vm3 = vcmp.eq.s32.totalorder %v90_v51, %v1812_v6  ;;  %v2189_v16 = vmov 0 }
  0x3f   :  { %1279 = vmatpush3.bf16.msra.mxu0 %v1518_v23  ;;  %1389 = vmatpush3.bf16.msra.mxu1 %v1517_v20  ;;  %v98_v20 = vand.u32 7, %v82_v17  ;;  %v97_v23 = vand.u32 7, %v81_v21  ;;  %v2186_v49 = vsel %vm1917_vm0, 4294967295, %v2185_v49  ;;  %v2188_v53 = vsel %vm1927_vm3, 4294967295, %v2187_v53 }
  0x40   :  { %1280 = vmatprep.subr.bf16.mxu0 %v1519_v25  ;;  %1390 = vmatprep.subr.bf16.mxu1 %v1520_v27  ;;  %v80_v25 = vadd.s32 80, %v1705_v12  ;;  %v86_v57 = vand.u32 7, %v1705_v12  ;;  %v2191_v19 = vmov 0  ;;  %v2193_v24 = vmov 0 }
  0x41   :  { %vm1847_vm14 = vcmp.eq.s32.totalorder %v98_v20, %v1812_v6  ;;  %vm1857_vm15 = vcmp.eq.s32.totalorder %v97_v23, %v1812_v6  ;;  %v2195_v58 = vmov 0 }
  0x43   :  { %1281 = vmatpush3.bf16.msra.mxu0 %v1521_v28  ;;  %1391 = vmatpush3.bf16.msra.mxu1 %v1520_v27  ;;  %v96_v27 = vand.u32 7, %v80_v25  ;;  %v79_v28 = vadd.s32 72, %v1705_v12 }
  0x44   :  { %1282 = vmatprep.subr.bf16.mxu0 %v1522_v30  ;;  %1392 = vmatprep.subr.bf16.mxu1 %v1523_v31 }
  0x45   :  { %vm1867_vm1 = vcmp.eq.s32.totalorder %v96_v27, %v1812_v6  ;;  %v95_v30 = vand.u32 7, %v79_v28 }
  0x47   :  { %1283 = vmatpush3.bf16.msra.mxu0 %v1524_v43  ;;  %1393 = vmatpush3.bf16.msra.mxu1 %v1523_v31  ;;  %v78_v31 = vadd.s32 64, %v1705_v12  ;;  %vm1877_vm2 = vcmp.eq.s32.totalorder %v95_v30, %v1812_v6  ;;  %v92_v43 = vand.u32 7, %v76_v40 }
  0x48   :  { %1398 = vmatprep.subr.mxu0 %v1647_v9  ;;  %v2178_v32 = vsel %vm1877_vm2, 4294967295, %v2177_v32 }
  0x49   :  { %v94_v36 = vand.u32 7, %v78_v31  ;;  %vm1907_vm8 = vcmp.eq.s32.totalorder %v92_v43, %v1812_v6 }
  0x4a   :  { %1190 = vmatmul.mubr.msk.bf16.vlgmr.msra.gmra.mxu0 %vm1763_vm7, %v1189_v60  ;;  %1395 = vmatmul.mubr.msk.bf16.vlgmr.msra.gmra.mxu1 %vm1780_vm9, %v1198_v61  ;;  %v2184_v45 = vsel %vm1907_vm8, 4294967295, %v2183_v45 }
  0x4b   :  { %449 = vmatprep.mubr.bf16.mxu0 %v215_v62  ;;  %1399 = vmatpush3.msk.msra.mxu0 %vm1817_vm11, %v1648_v14  ;;  %vm1887_vm4 = vcmp.eq.s32.totalorder %v94_v36, %v1812_v6 }
  0x4c   :  { %1400 = vmatprep.subr.mxu0 %v1647_v9  ;;  %v2180_v38 = vsel %vm1887_vm4, 4294967295, %v2179_v38 }
  0x4d   :  { %1401 = vmatpush3.msk.msra.mxu0 %vm1827_vm12, %v1648_v14 }
  0x4e   :  { %1402 = vmatprep.subr.mxu0 %v1647_v9 }
  0x4f   :  { %1403 = vmatpush3.msk.msra.mxu0 %vm1837_vm13, %v1648_v14 }
  0x50   :  { %1404 = vmatprep.subr.mxu0 %v1647_v9 }
  0x51   :  { %1405 = vmatpush3.msk.msra.mxu0 %vm1847_vm14, %v1648_v14 }
  0x52   :  { %1193 = vmatmul.mubr.msk.bf16.gmra.mxu0 %vm1796_vm10, %v1192_v2  ;;  %1406 = vmatprep.subr.mxu0 %v1647_v9 }
  0x53   :  { %1407 = vmatpush3.msk.msra.mxu0 %vm1857_vm15, %v1648_v14 }
  0x54   :  { %1408 = vmatprep.subr.mxu0 %v1647_v9 }
  0x55   :  { %1409 = vmatpush3.msk.msra.mxu0 %vm1867_vm1, %v1648_v14 }
  0x56   :  { %1410 = vmatprep.subr.mxu0 %v1647_v9 }
  0x57   :  { %1411 = vmatpush3.msk.msra.mxu0 %vm1877_vm2, %v1648_v14 }
  0x58   :  { %1412 = vmatprep.subr.mxu0 %v1647_v9 }
  0x59   :  { %1413 = vmatpush3.msk.msra.mxu0 %vm1887_vm4, %v1648_v14 }
  0x5a   :  { %1414 = vmatprep.subr.mxu0 %v1647_v9 }
  0x5b   :  { %1415 = vmatpush3.msk.msra.mxu0 %vm1897_vm5, %v1648_v14  ;;  %vm1955_vm5 = vcmp.eq.s32.totalorder %v87_v52, %v1812_v6 }
  0x5c   :  { %1416 = vmatprep.subr.mxu0 %v1647_v9  ;;  %v2194_v24 = vsel %vm1955_vm5, 4294967295, %v2193_v24 }
  0x5d   :  { %1417 = vmatpush3.msk.msra.mxu0 %vm1907_vm8, %v1648_v14  ;;  %vm2141_vm8 = vmmov 0  }
  0x5e   :  { %1418 = vmatprep.subr.mxu0 %v1647_v9  ;;  %1430 = vmatprep.mubr.msk.f32.mxu0 %vm2141_vm8, %v1647_v9  ;;  %vm1964_vm8 = vcmp.eq.s32.totalorder %v86_v57, %v1812_v6 }
  0x5f   :  { %1419 = vmatpush3.msk.msra.mxu0 %vm1917_vm0, %v1648_v14  ;;  %vm1938_vm0 = vcmp.eq.s32.totalorder %v89_v54, %v1812_v6  ;;  %v2196_v58 = vsel %vm1964_vm8, 4294967295, %v2195_v58 }
  0x60   :  { %1420 = vmatprep.subr.mxu0 %v1647_v9  ;;  %v2190_v16 = vsel %vm1938_vm0, 4294967295, %v2189_v16 }
  0x61   :  { %1421 = vmatpush3.msk.msra.mxu0 %vm1927_vm3, %v1648_v14  ;;  %vm1949_vm3 = vcmp.eq.s32.totalorder %v88_v56, %v1812_v6 }
  0x62   :  { %1422 = vmatprep.subr.mxu0 %v1647_v9  ;;  %v2192_v19 = vsel %vm1949_vm3, 4294967295, %v2191_v19 }
  0x63   :  { %1423 = vmatpush3.msk.msra.mxu0 %vm1938_vm0, %v1648_v14 }
  0x64   :  { %1424 = vmatprep.subr.mxu0 %v1647_v9 }
  0x65   :  { %1425 = vmatpush3.msk.msra.mxu0 %vm1949_vm3, %v1648_v14  ;;  %vm2199_vm3 = vcmp.lt.s32.totalorder %v1705_v12, 7 }
  0x66   :  { %1426 = vmatprep.subr.mxu0 %v1647_v9  ;;  %vm2200_vm0 = vmmov %vm2199_vm3 }
  0x67   :  { %1427 = vmatpush3.msk.msra.mxu0 %vm1955_vm5, %v1648_v14  ;;  %vm2201_vm4 = vmmov %vm2200_vm0 }
  0x68   :  { %1428 = vmatprep.subr.mxu0 %v1647_v9  ;;  %vm2202_vm2 = vmmov %vm2200_vm0 }
  0x69   :  { %1429 = vmatpush3.msk.msra.mxu0 %vm1964_vm8, %v1648_v14  ;;  %vm2143_vm8 = vcmask 1040384  }
 0x10a   :  { %v1284_v59 = vpop.f32.mrf.mxu0  ;;  %v1396_v60 = vpop.f32.mrf.mxu1 }
 0x10c   :  { %v1285_v61 = vpop.f32.mrf.mxu0  ;;  %v492_v62 = vpop.f32.mrf.mxu1 }
 0x10d   :  { %v1286_v3 = vadd.f32 %v1285_v61, %v1284_v59 }
 0x10e   :  { %v1287_v0 = vpop.f32.mrf.mxu0  ;;  %v1397_v1 = vpop.f32.mrf.mxu1 }
 0x10f   :  { %v1977_v13 = vadd.f32 %v1286_v3, %v492_v62  ;;  %v1526_v3 = vld [vmem:[#allocation7 + $0x38] sm:$0xff]  }
 0x110   :  { %v1288_v2 = vpop.f32.mrf.mxu0  ;;  %v495_v5 = vpop.f32.mrf.mxu1 }
 0x111   :  { %v1289_v4 = vadd.f32 %v1288_v2, %v1287_v0  ;;  %v518_v25 = vmul.f32 %v1977_v13, %v1977_v13  ;;  %v1525_v2 = vld [vmem:[#allocation7 + $0x78] sm:$0xff]  }
 0x112   :  { %v1290_v6 = vpop.f32.mrf.mxu0  ;;  %1323 = vmatprep.subr.bf16.mxu1 %v1525_v2 }
 0x113   :  { %v1975_v8 = vadd.f32 %v1289_v4, %v495_v5  ;;  %v1527_v4 = vld [vmem:[#allocation7 + $0xb8] sm:$0xff]   ;;  %1324 = vmatpush3.bf16.msra.mxu1 %v1526_v3  ;;  %v1528_v5 = vld [vmem:[#allocation7 + $0x70] sm:$0xff]  }
 0x114   :  { %v1291_v11 = vpop.f32.mrf.mxu0  ;;  %1433 = vmatprep.subr.bf16.mxu0 %v1527_v4  ;;  %1325 = vmatprep.subr.bf16.mxu1 %v1528_v5 }
 0x115   :  { %v1292_v15 = vadd.f32 %v1291_v11, %v1290_v6  ;;  %v519_v20 = vmul.f32 %v1975_v8, %v1975_v8  ;;  %v509_v27 = vadd.f32 %v1975_v8, %v1977_v13  ;;  %v1529_v6 = vld [vmem:[#allocation7 + $0x30] sm:$0xff]  }
 0x116   :  { %v1293_v17 = vpop.f32.mrf.mxu0  ;;  %v1530_v11 = vld [vmem:[#allocation7 + $0xb0] sm:$0xff]  }
 0x117   :  { %v1981_v21 = vadd.f32 %v1396_v60, %v1292_v15  ;;  %v522_v31 = vadd.f32 %v519_v20, %v518_v25  ;;  %1326 = vmatpush3.bf16.msra.mxu1 %v1529_v6  ;;  %v1531_v15 = vld [vmem:[#allocation7 + $0x68] sm:$0xff]   ;;  %v1535_v25 = vld [vmem:[#allocation7 + $0x20] sm:$0xff]  }
 0x118   :  { %v1294_v23 = vpop.f32.mrf.mxu0  ;;  %v1533_v20 = vld [vmem:[#allocation7 + $0xa8] sm:$0xff]   ;;  %1327 = vmatprep.subr.bf16.mxu1 %v1531_v15 }
 0x119   :  { %v520_v28 = vmul.f32 %v1981_v21, %v1981_v21  ;;  %v1295_v30 = vadd.f32 %v1294_v23, %v1293_v17  ;;  %v510_v36 = vadd.f32 %v509_v27, %v1981_v21  ;;  %v1532_v17 = vld [vmem:[#allocation7 + $0x28] sm:$0xff]   ;;  %v1534_v23 = vld [vmem:[#allocation7 + $0x60] sm:$0xff]  }
 0x11a   :  { %v1536_v27 = vld [vmem:[#allocation7 + $0xa0] sm:$0xff]  }
 0x11b   :  { %v1990_v37 = vadd.f32 %v1397_v1, %v1295_v30  ;;  %v523_v39 = vadd.f32 %v522_v31, %v520_v28  ;;  %1328 = vmatpush3.bf16.msra.mxu1 %v1532_v17  ;;  %v1537_v28 = vld [vmem:[#allocation7 + $0x58] sm:$0xff]   ;;  %v2006_v17 = vsub.s32 0, %v1705_v12 }
 0x11c   :  { %1329 = vmatprep.subr.bf16.mxu1 %v1534_v23  ;;  %v1538_v30 = vld [vmem:[#allocation7 + $0x18] sm:$0xff]   ;;  %v508_v23 = vld [vmem:[%s2131_s4] sm:$0x1] }
 0x11d   :  { %v511_v40 = vadd.f32 %v510_v36, %v1990_v37  ;;  %v521_v43 = vmul.f32 %v1990_v37, %v1990_v37  ;;  %v1539_v31 = vld [vmem:[#allocation7 + $0x98] sm:$0xff]   ;;  %v1540_v36 = vld [vmem:[#allocation7 + $0x50] sm:$0xff]  }
 0x11f   :  { %v512_v44 = vrot.slane %v511_v40, 4  ;;  %v524_v47 = vadd.f32 %v523_v39, %v521_v43  ;;  %1330 = vmatpush3.bf16.msra.mxu1 %v1535_v25  ;;  %v1541_v39 = vld [vmem:[#allocation7 + $0x10] sm:$0xff]   ;;  %v1543_v43 = vld [vmem:[#allocation7 + $0x48] sm:$0xff]  }
 0x120   :  { %1331 = vmatprep.subr.bf16.mxu1 %v1537_v28 }
 0x121   :  { %v513_v48 = vadd.f32 %v512_v44, %v511_v40  ;;  %v525_v51 = vrot.slane %v524_v47, 4  ;;  %v1542_v40 = vld [vmem:[#allocation7 + $0x90] sm:$0xff]   ;;  %v1544_v44 = vld [vmem:[#allocation7 + $0x8] sm:$0xff]  }
 0x123   :  { %v514_v52 = vrot.slane %v513_v48, 2  ;;  %v526_v54 = vadd.f32 %v525_v51, %v524_v47  ;;  %1332 = vmatpush3.bf16.msra.mxu1 %v1538_v30  ;;  %v1545_v47 = vld [vmem:[#allocation7 + $0x88] sm:$0xff]   ;;  %v1547_v51 = vld [vmem:[#allocation7] sm:$0xff]  }
 0x124   :  { %1333 = vmatprep.subr.bf16.mxu1 %v1540_v36 }
 0x125   :  { %v515_v56 = vadd.f32 %v514_v52, %v513_v48  ;;  %v527_v57 = vrot.slane %v526_v54, 2  ;;  %v1546_v48 = vld [vmem:[#allocation7 + $0x40] sm:$0xff]  }
 0x126   :  { %v1548_v52 = vld [vmem:[#allocation7 + $0x80] sm:$0xff]  }
 0x127   :  { %v516_v59 = vrot.slane %v515_v56, 1  ;;  %v528_v60 = vadd.f32 %v527_v57, %v526_v54  ;;  %1334 = vmatpush3.bf16.msra.mxu1 %v1541_v39 }
 0x128   :  { %1335 = vmatprep.subr.bf16.mxu1 %v1543_v43 }
 0x129   :  { %v529_v61 = vrot.slane %v528_v60, 1  ;;  %v517_v62 = vadd.f32 %v516_v59, %v515_v56 }
 0x12b   :  { %v530_v0 = vadd.f32 %v529_v61, %v528_v60  ;;  %1336 = vmatpush3.bf16.msra.mxu1 %v1544_v44 }
 0x12c   :  { %1337 = vmatprep.subr.bf16.mxu1 %v1546_v48 }
 0x12d   :  { %v532_v1 = vsel %vm2143_vm8, %v517_v62, %v530_v0  ;;  %v1650_v0 = vmov 1966171168   ;;  %vm2197_vm8 = vcmp.lt.s32.totalorder %v1705_v12, 1 }
 0x12e   :  { %1431 = vmatmul.mubr.f32.vlgmr.msra.gmra.mxu0 %v532_v1  ;;  %v613_v1 = vunpack.c.l.s4 %v1650_v0  ;;  %vm2198_vm5 = vmmov %vm2197_vm8 }
 0x12f   :  { %1434 = vmatpush3.bf16.msra.mxu0 %v1527_v4  ;;  %1338 = vmatpush3.bf16.msra.mxu1 %v1547_v51 }
 0x130   :  { %1435 = vmatprep.subr.bf16.mxu0 %v1530_v11  ;;  %1453 = vmatprep.subr.mxu1 %v1647_v9  ;;  %v614_v2 = vunpack.c.0.s8 %v613_v1 }
 0x132   :  { %v1998_v3 = vsub.s32 %v614_v2, %v1705_v12 }
 0x133   :  { %1436 = vmatpush3.bf16.msra.mxu0 %v1530_v11  ;;  %v507_v11 = vld [vmem:[%s2130_s3] sm:$0x1] }
 0x134   :  { %1437 = vmatprep.subr.bf16.mxu0 %v1533_v20 }
 0x137   :  { %1438 = vmatpush3.bf16.msra.mxu0 %v1533_v20 }
 0x138   :  { %1439 = vmatprep.subr.bf16.mxu0 %v1536_v27 }
 0x13b   :  { %1440 = vmatpush3.bf16.msra.mxu0 %v1536_v27 }
 0x13c   :  { %1441 = vmatprep.subr.bf16.mxu0 %v1539_v31 }
 0x13f   :  { %1442 = vmatpush3.bf16.msra.mxu0 %v1539_v31 }
 0x140   :  { %1443 = vmatprep.subr.bf16.mxu0 %v1542_v40 }
 0x143   :  { %1444 = vmatpush3.bf16.msra.mxu0 %v1542_v40 }
 0x144   :  { %1445 = vmatprep.subr.bf16.mxu0 %v1545_v47 }
 0x147   :  { %1446 = vmatpush3.bf16.msra.mxu0 %v1545_v47 }
 0x148   :  { %1447 = vmatprep.subr.bf16.mxu0 %v1548_v52 }
 0x14b   :  { %1448 = vmatpush3.bf16.msra.mxu0 %v1548_v52 }
 0x1ee   :  { %v599_v54 = vpop.f32.mrf.mxu0 }
 0x1ef   :  { %v603_v56 = vmul.f32 0.001953125, %v599_v54 }
 0x1f0   :  { %v1432_v57 = vpop.f32.mrf.mxu0 }
 0x1f1   :  { %v604_v59 = vmul.f32 %v603_v56, %v603_v56 }
 0x1f3   :  { %v606_v60 = vrot.slane %v604_v59, 7 }
 0x1f5   :  { %v608_v61 = vsub.f32 %v603_v56, %v606_v60 }
 0x1f7   :  { %v609_v62 = vadd.f32 1e-05, %v608_v61 }
 0x1f9   :  { %1549 = vrsqrt.f32 %v609_v62 }
 0x206   :  { %v1550_v4 = vpop.eup %1549 }
 0x207   :  { %v618_v5 = vrot.slane %v1550_v4, %v1998_v3 }
 0x209   :  { %v619_v6 = vcombine.high %v618_v5, %v618_v5 }
 0x20b   :  { %v626_v15 = vrot.slane %v619_v6, %v1998_v3 }
 0x20d   :  { %v628_v20 = vmul.f32 %v626_v15, %v507_v11 }
 0x20f   :  { %v629_v25 = vmul.f32 %v628_v20, %v603_v56  ;;  %v635_v27 = vrot.slane %v628_v20, %v2006_v17 }
 0x211   :  { %v630_v28 = vsub.f32 %v508_v23, %v629_v25  ;;  %v639_v30 = vmul.f32 %v635_v27, %v1981_v21  ;;  %v640_v31 = vmul.f32 %v635_v27, %v1990_v37  ;;  %v637_v39 = vmul.f32 %v635_v27, %v1977_v13 }
 0x212   :  { %v638_v40 = vmul.f32 %v635_v27, %v1975_v8 }
 0x213   :  { %v645_v36 = vrot.slane %v630_v28, %v2006_v17 }
 0x215   :  { %v649_v43 = vadd.f32 %v645_v36, %v639_v30  ;;  %v650_v44 = vadd.f32 %v645_v36, %v640_v31  ;;  %v647_v47 = vadd.f32 %v645_v36, %v637_v39  ;;  %v648_v48 = vadd.f32 %v645_v36, %v638_v40 }
 0x217   :  { %v654_v51 = vmax.f32 %v650_v44, 0.0  ;;  %v651_v52 = vmax.f32 %v647_v47, 0.0  ;;  %v652_v54 = vmax.f32 %v648_v48, 0.0  ;;  %v653_v56 = vmax.f32 %v649_v43, 0.0 }
 0x219   :  { %v655_v57 = vrot.slane %v651_v52, 7  ;;  %v656_v59 = vrot.slane %v652_v54, 7  ;;  %v680_v60 = vpack.c.bf16 %v652_v54, %v651_v52  ;;  %v658_v21 = vrot.slane %v654_v51, 7 }
 0x21a   :  { %v667_v61 = vrot.slane %v651_v52, 1  ;;  %v668_v37 = vrot.slane %v652_v54, 1  ;;  %v669_v62 = vrot.slane %v653_v56, 1  ;;  %v670_v0 = vrot.slane %v654_v51, 1 }
 0x21b   :  { %909 = vmatprep.mubr.bf16.mxu1 %v680_v60  ;;  %v661_v13 = vsel %vm2197_vm8, %v655_v57, %v656_v59  ;;  %v662_v8 = vsel %vm2198_vm5, %v658_v21, %v655_v57  ;;  %v683_v5 = vpack.c.bf16 %v654_v51, %v653_v56  ;;  %v657_v20 = vrot.slane %v653_v56, 7 }
 0x21c   :  { %v1241_v1 = vpack.c.bf16 %v661_v13, %v662_v8  ;;  %v672_v2 = vsel %vm2199_vm3, %v668_v37, %v669_v62  ;;  %v673_v4 = vsel %vm2200_vm0, %v667_v61, %v668_v37  ;;  %v671_v11 = vsel %vm2201_vm4, %v669_v62, %v670_v0  ;;  %vm2203_vm0 = vmmov %vm2198_vm5 }
 0x21d   :  { %v1247_v6 = vpack.c.bf16 %v672_v2, %v673_v4  ;;  %v674_v15 = vsel %vm2202_vm2, %v670_v0, %v667_v61  ;;  %v659_v25 = vsel %vm2203_vm0, %v657_v20, %v658_v21  ;;  %vm2204_vm3 = vmmov %vm2203_vm0  ;;  %vm2215_vm2 = vnez %v2196_v58 }
 0x21e   :  { %1242 = vmatmul.mubr.msk.bf16.vlgmr.msra.gmra.mxu1 %vm1763_vm7, %v1241_v1  ;;  %v1250_v23 = vpack.c.bf16 %v674_v15, %v671_v11  ;;  %v660_v27 = vsel %vm2204_vm3, %v656_v59, %v657_v20  ;;  %vm2206_vm7 = vnez %v2178_v32  ;;  %vm2216_vm4 = vcmask 1040384   ;;  %v975_v20 = vld [vmem:[%s2132_s5] sm:$0x1]  ;;  %s1651_s5 = smov [#allocation8]  }
 0x21f   :  { %1449 = vmatprep.mubr.msk.bf16.mxu0 %vm1752_vm6, %v1247_v6  ;;  %917 = vmatprep.mubr.bf16.mxu1 %v683_v5  ;;  %v1244_v46 = vpack.c.bf16 %v659_v25, %v660_v27  ;;  %vm2205_vm6 = vmmov 0   ;;  %v976_v27 = vld [vmem:[%s2133_s6] sm:$0x1]  ;;  %s1135_s6 = sshll.u32 %s1651_s5, 4  ;;  %s1136_s6 = int_to_ptr.vmem [resolvable:$true] %s1135_s6 }
 0x220   :  { %1450 = vmatmul.mubr.msk.bf16.vlgmr.msra.gmra.mxu0 %vm1780_vm9, %v1250_v23  ;;  %1454 = vmatpush3.msk.msra.mxu1 %vm1817_vm11, %v1648_v14  ;;  %vm2207_vm9 = vnez %v2180_v38  ;;  %vm2209_vm11 = vnez %v2184_v45  ;;  %s1613_s23 = scalar_lea.vmem %s1136_s6, 512  ;;  %p1618_p2 = scmp.lt.s32.totalorder %s1136_s6, %s1136_s6 }
 0x221   :  { %1455 = vmatprep.subr.mxu1 %v1647_v9  ;;  %p1614_p1 = scmp.ne.s32.totalorder %s1136_s6, %s1613_s23  ;;  %p1619_p3 = scmp.lt.s32.totalorder %s1613_s23, %s1613_s23 }
 0x222   :  { %1456 = vmatpush3.msk.msra.mxu1 %vm1827_vm12, %v1648_v14  ;;  %vm2210_vm12 = vnez %v2186_v49 }
 0x223   :  { %1457 = vmatprep.subr.mxu1 %v1647_v9  ;;  %p1620_p4 = por %p1619_p3, %p1618_p2 }
 0x224   :  { %1458 = vmatpush3.msk.msra.mxu1 %vm1837_vm13, %v1648_v14  ;;  %vm2211_vm13 = vnez %v2188_v53 }
 0x225   :  { %1459 = vmatprep.subr.mxu1 %v1647_v9  ;;  %p1621_p5 = pnand %p1620_p4, %p1614_p1 }
 0x226   :  { %1245 = vmatmul.mubr.msk.bf16.gmra.mxu1 %vm1796_vm10, %v1244_v46  ;;  %vm2208_vm10 = vnez %v2182_v41 }
 0x227   :  { %1460 = vmatpush3.msk.msra.mxu1 %vm1847_vm14, %v1648_v14  ;;  %1485 = vmatprep.mubr.msk.f32.mxu1 %vm2205_vm6, %v1647_v9  ;;  %vm2212_vm14 = vnez %v2190_v16 }
 0x228   :  { %1461 = vmatprep.subr.mxu1 %v1647_v9 }
 0x229   :  { %1462 = vmatpush3.msk.msra.mxu1 %vm1857_vm15, %v1648_v14  ;;  %vm2213_vm15 = vnez %v2192_v19 }
 0x22a   :  { %1463 = vmatprep.subr.mxu1 %v1647_v9 }
 0x22b   :  { %1464 = vmatpush3.msk.msra.mxu1 %vm1867_vm1, %v1648_v14  ;;  %vm2214_vm1 = vnez %v2194_v24 }
 0x22c   :  { %1465 = vmatprep.subr.mxu1 %v1647_v9 }
 0x22d   :  { %1466 = vmatpush3.msk.msra.mxu1 %vm2206_vm7, %v1648_v14 }
 0x22e   :  { %1467 = vmatprep.subr.mxu1 %v1647_v9 }
 0x22f   :  { %1468 = vmatpush3.msk.msra.mxu1 %vm2207_vm9, %v1648_v14 }
 0x230   :  { %1469 = vmatprep.subr.mxu1 %v1647_v9 }
 0x231   :  { %1470 = vmatpush3.msk.msra.mxu1 %vm2208_vm10, %v1648_v14 }
 0x232   :  { %1471 = vmatprep.subr.mxu1 %v1647_v9 }
 0x233   :  { %1472 = vmatpush3.msk.msra.mxu1 %vm2209_vm11, %v1648_v14 }
 0x234   :  { %1473 = vmatprep.subr.mxu1 %v1647_v9 }
 0x235   :  { %1474 = vmatpush3.msk.msra.mxu1 %vm2210_vm12, %v1648_v14 }
 0x236   :  { %1475 = vmatprep.subr.mxu1 %v1647_v9 }
 0x237   :  { %1476 = vmatpush3.msk.msra.mxu1 %vm2211_vm13, %v1648_v14 }
 0x238   :  { %1477 = vmatprep.subr.mxu1 %v1647_v9 }
 0x239   :  { %1478 = vmatpush3.msk.msra.mxu1 %vm2212_vm14, %v1648_v14 }
 0x23a   :  { %1479 = vmatprep.subr.mxu1 %v1647_v9 }
 0x23b   :  { %1480 = vmatpush3.msk.msra.mxu1 %vm2213_vm15, %v1648_v14 }
 0x23c   :  { %1481 = vmatprep.subr.mxu1 %v1647_v9 }
 0x23d   :  { %1482 = vmatpush3.msk.msra.mxu1 %vm2214_vm1, %v1648_v14 }
 0x23e   :  { %1483 = vmatprep.subr.mxu1 %v1647_v9 }
 0x23f   :  { %1484 = vmatpush3.msk.msra.mxu1 %vm2215_vm2, %v1648_v14 }
 0x2de   :  { %v1339_v12 = vpop.f32.mrf.mxu1 }
 0x2e0   :  { %v1451_v50 = vpop.f32.mrf.mxu0  ;;  %v1340_v55 = vpop.f32.mrf.mxu1 }
 0x2e1   :  { %v1341_v22 = vadd.f32 %v1340_v55, %v1339_v12 }
 0x2e2   :  { %v960_v63 = vpop.f32.mrf.mxu0  ;;  %v1342_v10 = vpop.f32.mrf.mxu1 }
 0x2e3   :  { %v961_v45 = vadd.f32 %v1341_v22, %v960_v63 }
 0x2e4   :  { %v1452_v7 = vpop.f32.mrf.mxu0  ;;  %v1343_v18 = vpop.f32.mrf.mxu1 }
 0x2e5   :  { %v1344_v26 = vadd.f32 %v1343_v18, %v1342_v10  ;;  %v986_v14 = vmul.f32 %v961_v45, %v961_v45 }
 0x2e6   :  { %v963_v29 = vpop.f32.mrf.mxu0  ;;  %v1345_v32 = vpop.f32.mrf.mxu1 }
 0x2e7   :  { %v964_v38 = vadd.f32 %v1344_v26, %v963_v29 }
 0x2e8   :  { %v1346_v41 = vpop.f32.mrf.mxu1 }
 0x2e9   :  { %v1347_v49 = vadd.f32 %v1346_v41, %v1345_v32  ;;  %v987_v53 = vmul.f32 %v964_v38, %v964_v38  ;;  %v977_v24 = vadd.f32 %v964_v38, %v961_v45 }
 0x2ea   :  { %v1348_v9 = vpop.f32.mrf.mxu1 }
 0x2eb   :  { %v969_v16 = vadd.f32 %v1451_v50, %v1347_v49  ;;  %v990_v30 = vadd.f32 %v987_v53, %v986_v14 }
 0x2ec   :  { %v1349_v19 = vpop.f32.mrf.mxu1 }
 0x2ed   :  { %v988_v58 = vmul.f32 %v969_v16, %v969_v16  ;;  %v1350_v28 = vadd.f32 %v1349_v19, %v1348_v9  ;;  %v978_v31 = vadd.f32 %v977_v24, %v969_v16 }
 0x2ef   :  { %v972_v36 = vadd.f32 %v1452_v7, %v1350_v28  ;;  %v991_v39 = vadd.f32 %v990_v30, %v988_v58 }
 0x2f1   :  { %v979_v40 = vadd.f32 %v978_v31, %v972_v36  ;;  %v989_v43 = vmul.f32 %v972_v36, %v972_v36 }
 0x2f3   :  { %v980_v44 = vrot.slane %v979_v40, 4  ;;  %v992_v47 = vadd.f32 %v991_v39, %v989_v43 }
 0x2f5   :  { %v981_v48 = vadd.f32 %v980_v44, %v979_v40  ;;  %v993_v51 = vrot.slane %v992_v47, 4 }
 0x2f7   :  { %v982_v52 = vrot.slane %v981_v48, 2  ;;  %v994_v54 = vadd.f32 %v993_v51, %v992_v47 }
 0x2f9   :  { %v983_v56 = vadd.f32 %v982_v52, %v981_v48  ;;  %v995_v57 = vrot.slane %v994_v54, 2 }
 0x2fb   :  { %v984_v59 = vrot.slane %v983_v56, 1  ;;  %v996_v60 = vadd.f32 %v995_v57, %v994_v54 }
 0x2fd   :  { %v997_v21 = vrot.slane %v996_v60, 1  ;;  %v985_v61 = vadd.f32 %v984_v59, %v983_v56 }
 0x2ff   :  { %v998_v37 = vadd.f32 %v997_v21, %v996_v60 }
 0x301   :  { %v999_v62 = vsel %vm2216_vm4, %v985_v61, %v998_v37 }
 0x302   :  { %1486 = vmatmul.mubr.f32.vlgmr.msra.gmra.mxu1 %v999_v62 }
 0x3c2   :  { %v1066_v13 = vpop.f32.mrf.mxu1 }
 0x3c3   :  { %v1070_v8 = vmul.f32 0.001953125, %v1066_v13 }
 0x3c4   :  { %v1487_v0 = vpop.f32.mrf.mxu1 }
 0x3c5   :  { %v1071_v1 = vmul.f32 %v1070_v8, %v1070_v8 }
 0x3c7   :  { %v1073_v2 = vrot.slane %v1071_v1, 7 }
 0x3c9   :  { %v1075_v4 = vsub.f32 %v1070_v8, %v1073_v2 }
 0x3cb   :  { %v1076_v5 = vadd.f32 1e-05, %v1075_v4 }
 0x3cd   :  { %1551 = vrsqrt.f32 %v1076_v5 }
 0x3da   :  { %v1552_v6 = vpop.eup %1551 }
 0x3db   :  { %v1085_v11 = vrot.slane %v1552_v6, %v1998_v3 }
 0x3dd   :  { %v1086_v15 = vcombine.high %v1085_v11, %v1085_v11 }
 0x3df   :  { %v1093_v23 = vrot.slane %v1086_v15, %v1998_v3 }
 0x3e1   :  { %v1095_v25 = vmul.f32 %v1093_v23, %v975_v20 }
 0x3e3   :  { %v1096_v46 = vmul.f32 %v1095_v25, %v1070_v8  ;;  %v1102_v12 = vrot.slane %v1095_v25, %v2006_v17 }
 0x3e5   :  { %v1097_v50 = vsub.f32 %v976_v27, %v1096_v46  ;;  %v1104_v55 = vmul.f32 %v1102_v12, %v961_v45  ;;  %v1105_v63 = vmul.f32 %v1102_v12, %v964_v38  ;;  %v1106_v10 = vmul.f32 %v1102_v12, %v969_v16 }
 0x3e6   :  { %v1107_v7 = vmul.f32 %v1102_v12, %v972_v36 }
 0x3e7   :  { %v1116_v18 = vrot.slane %v1097_v50, %v2006_v17  ;;  %v1108_v22 = vadd.f32 %v1104_v55, %v1725_v33  ;;  %v1109_v26 = vadd.f32 %v1105_v63, %v1727_v34  ;;  %v1110_v3 = vadd.f32 %v1106_v10, %v1729_v35 }
 0x3e8   :  { %v1111_v29 = vadd.f32 %v1107_v7, %v1745_v42 }
 0x3e9   :  { %v1118_v32 = vadd.f32 %v1116_v18, %v1108_v22  ;;  %v1119_v41 = vadd.f32 %v1116_v18, %v1109_v26  ;;  %v1120_v49 = vadd.f32 %v1116_v18, %v1110_v3 }
 0x3ea   :  { %v1121_v9 = vadd.f32 %v1116_v18, %v1111_v29 }
 0x3eb   :  { %v1122_v45 = vmax.f32 %v1118_v32, 0.0  ;;  %v1123_v38 = vmax.f32 %v1119_v41, 0.0  ;;  %v1124_v53 = vmax.f32 %v1120_v49, 0.0 }
 0x3ec   :  { %v1125_v16 = vmax.f32 %v1121_v9, 0.0 }
 0x3ed   :  { %1126 = vst [vmem:[#allocation8] sm:$0xff] %v1122_v45  ;;  %1127 = vst [vmem:[#allocation8 + $0x8] sm:$0xff] %v1123_v38 }
 0x3ee   :  { %1128 = vst [vmem:[#allocation8 + $0x10] sm:$0xff] %v1124_v53  ;;  %1129 = vst [vmem:[#allocation8 + $0x18] sm:$0xff] %v1125_v16 }
 0x3ef   :  { %1624 = shalt.err (!%p1621_p5)
}
 0x3f0   :  { %1141 = dma.vmem_to_hbm [thread:$0]  %s1136_s6, 512, %s2134_s7, [#allocation4], %s1643_s11, %s1643_s11, %s1644_s12  }
 0x3f1   :  { %1637 = dma.done.wait [#allocation4], 512  }
 0x3f2   :  { %1638 = vsyncadd [#allocation4], 4294966784 }
 0x3f3   :  { %1145 = vsyncpa [#allocation3], 1 }
 0x3f4   :  { %1146 = vsyncpa [#allocation6], 1 }
 0x3f5   :  { %1147 = vsyncpa [#allocation4], 1 }

</bundles_post_ra>
